<compile_context>
chip_gen: v7x
topology: tpu7x:2x2x1
jax: 0.10.0
libtpu: 0.0.40
codegen_flags: <defaults>
</compile_context>

<pallas_src>
import functools

import jax
import jax.numpy as jnp
from jax import lax
from jax.experimental import pallas as pl
from jax.experimental.pallas import tpu as pltpu


def _sconv_kernel(x_ref, mw_ref, pww_ref, pwb_ref, o_ref, *,
                  b_tile, cin, cout, W, HW):
    # x_ref  : (1, B*Cin, HW)   b_tile batch elements packed on sublanes
    # mw_ref : (9, B*Cin, HW)   masked depthwise weights: mask_k(pos) * dw_w[c,k]
    # pww_ref: (Cout, Cin)      pointwise weights
    # pwb_ref: (Cout, 1)        pointwise bias (depthwise bias already folded in)
    # o_ref  : (1, B*Cout, HW)
    x = x_ref[0]                                   # (B*Cin, HW)
    pww = pww_ref[...]                             # (Cout, Cin)
    pwb = pwb_ref[...]                             # (Cout, 1)

    # Depthwise 3x3, stride 1, pad 1: halo via lane rolls (XLU slot), border
    # handling baked into mw, so each tap is a single straight FMA on the VPU.
    acc = x * mw_ref[4]                            # center tap seeds the accumulator
    for ky in range(3):
        for kx in range(3):
            k = ky * 3 + kx
            if k == 4:
                continue
            d = (ky - 1) * W + (kx - 1)
            rolled = pltpu.roll(x, shift=(-d) % HW, axis=1)
            acc = acc + rolled * mw_ref[k]

    # Pointwise 1x1 per packed batch element. Cin/Cout are far too small for the
    # MXU to pay off on v5e; keep Cout-broadcast FMAs on the VPU, bias fused into
    # the first term.
    for b in range(b_tile):
        seg = acc[b * cin:(b + 1) * cin, :]        # static slice, (Cin, HW)
        out_b = pww[:, 0:1] * seg[0:1, :] + pwb
        for ci in range(1, cin):
            out_b = out_b + pww[:, ci:ci + 1] * seg[ci:ci + 1, :]
        o_ref[0, b * cout:(b + 1) * cout, :] = out_b.astype(o_ref.dtype)


def s_conv_pallas(x_nchw, dw_w, dw_b, pw_w, pw_b):
    """x_nchw: (N, Cin, H, W). Weights follow PyTorch conventions:
       dw_w (Cin,1,3,3), dw_b (Cin,), pw_w (Cout,Cin,1,1), pw_b (Cout,)."""
    N, cin, H, W = x_nchw.shape
    cout = pw_w.shape[0]
    HW = H * W
    HW_pad = ((HW + 127) // 128) * 128             # keep the lane axis 128-aligned

    # Generation-aware batch packing: v5e/v6e have 1 TensorCore per chip, so pack
    # batch elements into sublanes (full vregs, fewer grid steps). v7x has 2 TCs,
    # so only pack if we still keep >= num_tc parallel grid steps.
    try:
        kind = jax.devices()[0].device_kind.lower()
    except Exception:  # pragma: no cover - defensive; default to 1-TC behavior
        kind = ""
    num_tc = 2 if "v7" in kind else 1

    want = max(1, 8 // max(cin, 1))                # fill 8 sublanes per vreg
    b_tile = 1
    for cand in range(min(want, N), 0, -1):
        if N % cand == 0 and (N // cand) >= num_tc:
            b_tile = cand
            break

    n_blk = N // b_tile
    cin_b = b_tile * cin
    cout_b = b_tile * cout

    # Metadata-only reshape: (N, Cin, H, W) -> (N/B, B*Cin, HW); lane pad only if
    # HW is not already a multiple of 128 (no-op here).
    x_flat = x_nchw.reshape(n_blk, cin_b, HW)
    if HW_pad != HW:
        x_flat = jnp.pad(x_flat, ((0, 0), (0, 0), (0, HW_pad - HW)))

    # Precomputed masked-weight table: mw[k, c, pos] = mask_k(pos) * dw_w[c, tap k].
    pos = jnp.arange(HW_pad, dtype=jnp.int32)
    row = pos // W
    col = pos % W
    valid = pos < HW
    masks = []
    for ky in range(3):
        dy = ky - 1
        for kx in range(3):
            dx = kx - 1
            m = (valid
                 & (row + dy >= 0) & (row + dy < H)
                 & (col + dx >= 0) & (col + dx < W))
            masks.append(m)
    masks = jnp.stack(masks).astype(jnp.float32)                 # (9, HW_pad)
    dww = dw_w[:, 0, :, :].reshape(cin, 9).astype(jnp.float32)   # (Cin, 9)
    mw = dww.T[:, :, None] * masks[:, None, :]                   # (9, Cin, HW_pad)
    mw = jnp.tile(mw, (1, b_tile, 1))                            # (9, B*Cin, HW_pad)

    pww = pw_w[:, :, 0, 0].astype(jnp.float32)                   # (Cout, Cin)
    # Fold depthwise bias into pointwise bias: (acc+dwb)W + b = accW + (W@dwb + b)
    pwb = (pw_b + pww @ dw_b).reshape(cout, 1).astype(jnp.float32)

    kernel = functools.partial(_sconv_kernel, b_tile=b_tile, cin=cin, cout=cout,
                               W=W, HW=HW_pad)

    # TODO(synk): for production H/W add a spatial grid axis (tile H with a 1-row
    # halo in the BlockSpec, since pltpu.roll wraps within a tile) and derive the
    # tile from a per-generation VMEM budget (v7x: 64 MiB physical / 32 MiB scoped
    # default) via pltpu.CompilerParams(vmem_limit_bytes=...).
    out_flat = pl.pallas_call(
        kernel,
        out_shape=jax.ShapeDtypeStruct((n_blk, cout_b, HW_pad), x_nchw.dtype),
        grid_spec=pltpu.PrefetchScalarGridSpec(
            num_scalar_prefetch=0,
            grid=(n_blk,),
            in_specs=[
                pl.BlockSpec((1, cin_b, HW_pad), lambda n: (n, 0, 0)),
                pl.BlockSpec((9, cin_b, HW_pad), lambda n: (0, 0, 0)),
                pl.BlockSpec((cout, cin), lambda n: (0, 0)),
                pl.BlockSpec((cout, 1), lambda n: (0, 0)),
            ],
            out_specs=pl.BlockSpec((1, cout_b, HW_pad), lambda n: (n, 0, 0)),
        ),
        compiler_params=pltpu.CompilerParams(
            dimension_semantics=("parallel",)),
    )(x_flat, mw, pww, pwb)

    out = out_flat.reshape(N, cout, HW_pad)        # metadata-only (packing undone)
    if HW_pad != HW:
        out = out[:, :, :HW]
    return out.reshape(N, cout, H, W)


def _reference(x_nchw, dw_w, dw_b, pw_w, pw_b):
    """Pure-JAX reference matching nn.Conv2d semantics (for validation)."""
    cin = x_nchw.shape[1]
    dw = lax.conv_general_dilated(
        x_nchw, dw_w, window_strides=(1, 1), padding=((1, 1), (1, 1)),
        dimension_numbers=("NCHW", "OIHW", "NCHW"), feature_group_count=cin)
    dw = dw + dw_b.reshape(1, -1, 1, 1)
    pw = lax.conv_general_dilated(
        dw, pw_w, window_strides=(1, 1), padding=((0, 0), (0, 0)),
        dimension_numbers=("NCHW", "OIHW", "NCHW"))
    return pw + pw_b.reshape(1, -1, 1, 1)


if __name__ == "__main__":
    N, C_IN, C_OUT, H, W = 2, 4, 8, 16, 16

    key = jax.random.PRNGKey(0)
    k1, k2, k3, k4, k5 = jax.random.split(key, 5)

    x = jax.random.normal(k1, (N, C_IN, H, W), dtype=jnp.float32)
    dw_w = jax.random.normal(k2, (C_IN, 1, 3, 3), dtype=jnp.float32) * 0.3
    dw_b = jax.random.normal(k3, (C_IN,), dtype=jnp.float32) * 0.1
    pw_w = jax.random.normal(k4, (C_OUT, C_IN, 1, 1), dtype=jnp.float32) * 0.3
    pw_b = jax.random.normal(k5, (C_OUT,), dtype=jnp.float32) * 0.1

    out = s_conv_pallas(x, dw_w, dw_b, pw_w, pw_b)
    out = jax.block_until_ready(out)

    ref = jax.block_until_ready(_reference(x, dw_w, dw_b, pw_w, pw_b))
    assert out.shape == (N, C_OUT, H, W)
    assert jnp.allclose(out, ref, atol=1e-4, rtol=1e-4)

    print("KERNEL_OK")
</pallas_src>

<mosaic_0001>
module attributes {stable_mosaic.version = 11 : i64} {
  func.func @_sconv_kernel(%arg0: i32, %arg1: memref<1x8x256xf32, #tpu.memory_space<vmem>>, %arg2: memref<9x8x256xf32, #tpu.memory_space<vmem>>, %arg3: memref<8x4xf32, #tpu.memory_space<vmem>>, %arg4: memref<8x1xf32, #tpu.memory_space<vmem>>, %arg5: memref<1x16x256xf32, #tpu.memory_space<vmem>>) attributes {dimension_semantics = [#tpu.dimension_semantics<parallel>], iteration_bounds = array<i64: 1>, scalar_prefetch = 0 : i64, scratch_operands = 0 : i64, tpu.core_type = #tpu.core_type<tc>, window_params = [{transform_indices = @transform_0, window_bounds = array<i64: 1, 8, 256>}, {pipeline_mode = #tpu.pipeline_mode<synchronous>, transform_indices = @transform_1, window_bounds = array<i64: 9, 8, 256>}, {pipeline_mode = #tpu.pipeline_mode<synchronous>, transform_indices = @transform_2, window_bounds = array<i64: 8, 4>}, {pipeline_mode = #tpu.pipeline_mode<synchronous>, transform_indices = @transform_3, window_bounds = array<i64: 8, 1>}, {transform_indices = @transform_4, window_bounds = array<i64: 1, 16, 256>}]} {
    %c0 = arith.constant 0 : index
    %c0_0 = arith.constant 0 : index
    %c0_1 = arith.constant 0 : index
    %0 = vector.load %arg1[%c0, %c0_0, %c0_1] : memref<1x8x256xf32, #tpu.memory_space<vmem>>, vector<1x8x256xf32>
    %1 = vector.shape_cast %0 : vector<1x8x256xf32> to vector<8x256xf32>
    %c0_2 = arith.constant 0 : index
    %c0_3 = arith.constant 0 : index
    %2 = vector.load %arg3[%c0_2, %c0_3] : memref<8x4xf32, #tpu.memory_space<vmem>>, vector<8x4xf32>
    %c0_4 = arith.constant 0 : index
    %c0_5 = arith.constant 0 : index
    %3 = vector.load %arg4[%c0_4, %c0_5] : memref<8x1xf32, #tpu.memory_space<vmem>>, vector<8x1xf32>
    %c4 = arith.constant 4 : index
    %c0_6 = arith.constant 0 : index
    %c0_7 = arith.constant 0 : index
    %4 = vector.load %arg2[%c4, %c0_6, %c0_7] : memref<9x8x256xf32, #tpu.memory_space<vmem>>, vector<1x8x256xf32>
    %5 = vector.shape_cast %4 : vector<1x8x256xf32> to vector<8x256xf32>
    %6 = arith.mulf %1, %5 : vector<8x256xf32>
    %c17_i32 = arith.constant 17 : i32
    %7 = tpu.dynamic_rotate %1 by %c17_i32 dim 1 : vector<8x256xf32>, i32 -> vector<8x256xf32>
    %c0_8 = arith.constant 0 : index
    %c0_9 = arith.constant 0 : index
    %c0_10 = arith.constant 0 : index
    %8 = vector.load %arg2[%c0_8, %c0_9, %c0_10] : memref<9x8x256xf32, #tpu.memory_space<vmem>>, vector<1x8x256xf32>
    %9 = vector.shape_cast %8 : vector<1x8x256xf32> to vector<8x256xf32>
    %10 = arith.mulf %7, %9 : vector<8x256xf32>
    %11 = arith.addf %6, %10 : vector<8x256xf32>
    %c16_i32 = arith.constant 16 : i32
    %12 = tpu.dynamic_rotate %1 by %c16_i32 dim 1 : vector<8x256xf32>, i32 -> vector<8x256xf32>
    %c1 = arith.constant 1 : index
    %c0_11 = arith.constant 0 : index
    %c0_12 = arith.constant 0 : index
    %13 = vector.load %arg2[%c1, %c0_11, %c0_12] : memref<9x8x256xf32, #tpu.memory_space<vmem>>, vector<1x8x256xf32>
    %14 = vector.shape_cast %13 : vector<1x8x256xf32> to vector<8x256xf32>
    %15 = arith.mulf %12, %14 : vector<8x256xf32>
    %16 = arith.addf %11, %15 : vector<8x256xf32>
    %c15_i32 = arith.constant 15 : i32
    %17 = tpu.dynamic_rotate %1 by %c15_i32 dim 1 : vector<8x256xf32>, i32 -> vector<8x256xf32>
    %c2 = arith.constant 2 : index
    %c0_13 = arith.constant 0 : index
    %c0_14 = arith.constant 0 : index
    %18 = vector.load %arg2[%c2, %c0_13, %c0_14] : memref<9x8x256xf32, #tpu.memory_space<vmem>>, vector<1x8x256xf32>
    %19 = vector.shape_cast %18 : vector<1x8x256xf32> to vector<8x256xf32>
    %20 = arith.mulf %17, %19 : vector<8x256xf32>
    %21 = arith.addf %16, %20 : vector<8x256xf32>
    %c1_i32 = arith.constant 1 : i32
    %22 = tpu.dynamic_rotate %1 by %c1_i32 dim 1 : vector<8x256xf32>, i32 -> vector<8x256xf32>
    %c3 = arith.constant 3 : index
    %c0_15 = arith.constant 0 : index
    %c0_16 = arith.constant 0 : index
    %23 = vector.load %arg2[%c3, %c0_15, %c0_16] : memref<9x8x256xf32, #tpu.memory_space<vmem>>, vector<1x8x256xf32>
    %24 = vector.shape_cast %23 : vector<1x8x256xf32> to vector<8x256xf32>
    %25 = arith.mulf %22, %24 : vector<8x256xf32>
    %26 = arith.addf %21, %25 : vector<8x256xf32>
    %c255_i32 = arith.constant 255 : i32
    %27 = tpu.dynamic_rotate %1 by %c255_i32 dim 1 : vector<8x256xf32>, i32 -> vector<8x256xf32>
    %c5 = arith.constant 5 : index
    %c0_17 = arith.constant 0 : index
    %c0_18 = arith.constant 0 : index
    %28 = vector.load %arg2[%c5, %c0_17, %c0_18] : memref<9x8x256xf32, #tpu.memory_space<vmem>>, vector<1x8x256xf32>
    %29 = vector.shape_cast %28 : vector<1x8x256xf32> to vector<8x256xf32>
    %30 = arith.mulf %27, %29 : vector<8x256xf32>
    %31 = arith.addf %26, %30 : vector<8x256xf32>
    %c241_i32 = arith.constant 241 : i32
    %32 = tpu.dynamic_rotate %1 by %c241_i32 dim 1 : vector<8x256xf32>, i32 -> vector<8x256xf32>
    %c6 = arith.constant 6 : index
    %c0_19 = arith.constant 0 : index
    %c0_20 = arith.constant 0 : index
    %33 = vector.load %arg2[%c6, %c0_19, %c0_20] : memref<9x8x256xf32, #tpu.memory_space<vmem>>, vector<1x8x256xf32>
    %34 = vector.shape_cast %33 : vector<1x8x256xf32> to vector<8x256xf32>
    %35 = arith.mulf %32, %34 : vector<8x256xf32>
    %36 = arith.addf %31, %35 : vector<8x256xf32>
    %c240_i32 = arith.constant 240 : i32
    %37 = tpu.dynamic_rotate %1 by %c240_i32 dim 1 : vector<8x256xf32>, i32 -> vector<8x256xf32>
    %c7 = arith.constant 7 : index
    %c0_21 = arith.constant 0 : index
    %c0_22 = arith.constant 0 : index
    %38 = vector.load %arg2[%c7, %c0_21, %c0_22] : memref<9x8x256xf32, #tpu.memory_space<vmem>>, vector<1x8x256xf32>
    %39 = vector.shape_cast %38 : vector<1x8x256xf32> to vector<8x256xf32>
    %40 = arith.mulf %37, %39 : vector<8x256xf32>
    %41 = arith.addf %36, %40 : vector<8x256xf32>
    %c239_i32 = arith.constant 239 : i32
    %42 = tpu.dynamic_rotate %1 by %c239_i32 dim 1 : vector<8x256xf32>, i32 -> vector<8x256xf32>
    %c8 = arith.constant 8 : index
    %c0_23 = arith.constant 0 : index
    %c0_24 = arith.constant 0 : index
    %43 = vector.load %arg2[%c8, %c0_23, %c0_24] : memref<9x8x256xf32, #tpu.memory_space<vmem>>, vector<1x8x256xf32>
    %44 = vector.shape_cast %43 : vector<1x8x256xf32> to vector<8x256xf32>
    %45 = arith.mulf %42, %44 : vector<8x256xf32>
    %46 = arith.addf %41, %45 : vector<8x256xf32>
    %47 = vector.extract_strided_slice %46 {offsets = [0, 0], sizes = [4, 256], strides = [1, 1]} : vector<8x256xf32> to vector<4x256xf32>
    %48 = vector.extract_strided_slice %2 {offsets = [0, 0], sizes = [8, 1], strides = [1, 1]} : vector<8x4xf32> to vector<8x1xf32>
    %49 = vector.extract_strided_slice %47 {offsets = [0, 0], sizes = [1, 256], strides = [1, 1]} : vector<4x256xf32> to vector<1x256xf32>
    %50 = vector.broadcast %48 : vector<8x1xf32> to vector<8x256xf32>
    %51 = vector.broadcast %49 : vector<1x256xf32> to vector<8x256xf32>
    %52 = arith.mulf %50, %51 : vector<8x256xf32>
    %53 = vector.broadcast %3 : vector<8x1xf32> to vector<8x256xf32>
    %54 = arith.addf %52, %53 : vector<8x256xf32>
    %55 = vector.extract_strided_slice %2 {offsets = [0, 1], sizes = [8, 1], strides = [1, 1]} : vector<8x4xf32> to vector<8x1xf32>
    %56 = vector.extract_strided_slice %47 {offsets = [1, 0], sizes = [1, 256], strides = [1, 1]} : vector<4x256xf32> to vector<1x256xf32>
    %57 = vector.broadcast %55 : vector<8x1xf32> to vector<8x256xf32>
    %58 = vector.broadcast %56 : vector<1x256xf32> to vector<8x256xf32>
    %59 = arith.mulf %57, %58 : vector<8x256xf32>
    %60 = arith.addf %54, %59 : vector<8x256xf32>
    %61 = vector.extract_strided_slice %2 {offsets = [0, 2], sizes = [8, 1], strides = [1, 1]} : vector<8x4xf32> to vector<8x1xf32>
    %62 = vector.extract_strided_slice %47 {offsets = [2, 0], sizes = [1, 256], strides = [1, 1]} : vector<4x256xf32> to vector<1x256xf32>
    %63 = vector.broadcast %61 : vector<8x1xf32> to vector<8x256xf32>
    %64 = vector.broadcast %62 : vector<1x256xf32> to vector<8x256xf32>
    %65 = arith.mulf %63, %64 : vector<8x256xf32>
    %66 = arith.addf %60, %65 : vector<8x256xf32>
    %67 = vector.extract_strided_slice %2 {offsets = [0, 3], sizes = [8, 1], strides = [1, 1]} : vector<8x4xf32> to vector<8x1xf32>
    %68 = vector.extract_strided_slice %47 {offsets = [3, 0], sizes = [1, 256], strides = [1, 1]} : vector<4x256xf32> to vector<1x256xf32>
    %69 = vector.broadcast %67 : vector<8x1xf32> to vector<8x256xf32>
    %70 = vector.broadcast %68 : vector<1x256xf32> to vector<8x256xf32>
    %71 = arith.mulf %69, %70 : vector<8x256xf32>
    %72 = arith.addf %66, %71 : vector<8x256xf32>
    %c0_25 = arith.constant 0 : index
    %c0_26 = arith.constant 0 : index
    %c0_27 = arith.constant 0 : index
    %73 = vector.load %arg5[%c0_25, %c0_26, %c0_27] : memref<1x16x256xf32, #tpu.memory_space<vmem>>, vector<1x8x256xf32>
    %74 = vector.shape_cast %73 : vector<1x8x256xf32> to vector<8x256xf32>
    %75 = vector.shape_cast %72 : vector<8x256xf32> to vector<1x8x256xf32>
    tpu.vector_store %arg5[%c0_25, %c0_26, %c0_27], %75 {strides = array<i32>} : memref<1x16x256xf32, #tpu.memory_space<vmem>>, vector<1x8x256xf32>,
    %76 = vector.extract_strided_slice %46 {offsets = [4, 0], sizes = [4, 256], strides = [1, 1]} : vector<8x256xf32> to vector<4x256xf32>
    %77 = vector.extract_strided_slice %2 {offsets = [0, 0], sizes = [8, 1], strides = [1, 1]} : vector<8x4xf32> to vector<8x1xf32>
    %78 = vector.extract_strided_slice %76 {offsets = [0, 0], sizes = [1, 256], strides = [1, 1]} : vector<4x256xf32> to vector<1x256xf32>
    %79 = vector.broadcast %77 : vector<8x1xf32> to vector<8x256xf32>
    %80 = vector.broadcast %78 : vector<1x256xf32> to vector<8x256xf32>
    %81 = arith.mulf %79, %80 : vector<8x256xf32>
    %82 = vector.broadcast %3 : vector<8x1xf32> to vector<8x256xf32>
    %83 = arith.addf %81, %82 : vector<8x256xf32>
    %84 = vector.extract_strided_slice %2 {offsets = [0, 1], sizes = [8, 1], strides = [1, 1]} : vector<8x4xf32> to vector<8x1xf32>
    %85 = vector.extract_strided_slice %76 {offsets = [1, 0], sizes = [1, 256], strides = [1, 1]} : vector<4x256xf32> to vector<1x256xf32>
    %86 = vector.broadcast %84 : vector<8x1xf32> to vector<8x256xf32>
    %87 = vector.broadcast %85 : vector<1x256xf32> to vector<8x256xf32>
    %88 = arith.mulf %86, %87 : vector<8x256xf32>
    %89 = arith.addf %83, %88 : vector<8x256xf32>
    %90 = vector.extract_strided_slice %2 {offsets = [0, 2], sizes = [8, 1], strides = [1, 1]} : vector<8x4xf32> to vector<8x1xf32>
    %91 = vector.extract_strided_slice %76 {offsets = [2, 0], sizes = [1, 256], strides = [1, 1]} : vector<4x256xf32> to vector<1x256xf32>
    %92 = vector.broadcast %90 : vector<8x1xf32> to vector<8x256xf32>
    %93 = vector.broadcast %91 : vector<1x256xf32> to vector<8x256xf32>
    %94 = arith.mulf %92, %93 : vector<8x256xf32>
    %95 = arith.addf %89, %94 : vector<8x256xf32>
    %96 = vector.extract_strided_slice %2 {offsets = [0, 3], sizes = [8, 1], strides = [1, 1]} : vector<8x4xf32> to vector<8x1xf32>
    %97 = vector.extract_strided_slice %76 {offsets = [3, 0], sizes = [1, 256], strides = [1, 1]} : vector<4x256xf32> to vector<1x256xf32>
    %98 = vector.broadcast %96 : vector<8x1xf32> to vector<8x256xf32>
    %99 = vector.broadcast %97 : vector<1x256xf32> to vector<8x256xf32>
    %100 = arith.mulf %98, %99 : vector<8x256xf32>
    %101 = arith.addf %95, %100 : vector<8x256xf32>
    %c0_28 = arith.constant 0 : index
    %c8_29 = arith.constant 8 : index
    %c0_30 = arith.constant 0 : index
    %102 = vector.load %arg5[%c0_28, %c8_29, %c0_30] : memref<1x16x256xf32, #tpu.memory_space<vmem>>, vector<1x8x256xf32>
    %103 = vector.shape_cast %102 : vector<1x8x256xf32> to vector<8x256xf32>
    %104 = vector.shape_cast %101 : vector<8x256xf32> to vector<1x8x256xf32>
    tpu.vector_store %arg5[%c0_28, %c8_29, %c0_30], %104 {strides = array<i32>} : memref<1x16x256xf32, #tpu.memory_space<vmem>>, vector<1x8x256xf32>,
    return
  }
  func.func @transform_0(%arg0: i32) -> (i32, i32, i32) {
    %c0_i32 = arith.constant 0 : i32
    %c0_i32_0 = arith.constant 0 : i32
    %c0_i32_1 = arith.constant 0 : i32
    return %arg0, %c0_i32, %c0_i32_0 : i32, i32, i32
  }
  func.func @transform_1(%arg0: i32) -> (i32, i32, i32) {
    %c0_i32 = arith.constant 0 : i32
    %c0_i32_0 = arith.constant 0 : i32
    %c0_i32_1 = arith.constant 0 : i32
    %c0_i32_2 = arith.constant 0 : i32
    return %c0_i32, %c0_i32_0, %c0_i32_1 : i32, i32, i32
  }
  func.func @transform_2(%arg0: i32) -> (i32, i32) {
    %c0_i32 = arith.constant 0 : i32
    %c0_i32_0 = arith.constant 0 : i32
    %c0_i32_1 = arith.constant 0 : i32
    return %c0_i32, %c0_i32_0 : i32, i32
  }
  func.func @transform_3(%arg0: i32) -> (i32, i32) {
    %c0_i32 = arith.constant 0 : i32
    %c0_i32_0 = arith.constant 0 : i32
    %c0_i32_1 = arith.constant 0 : i32
    return %c0_i32, %c0_i32_0 : i32, i32
  }
  func.func @transform_4(%arg0: i32) -> (i32, i32, i32) {
    %c0_i32 = arith.constant 0 : i32
    %c0_i32_0 = arith.constant 0 : i32
    %c0_i32_1 = arith.constant 0 : i32
    return %arg0, %c0_i32, %c0_i32_0 : i32, i32, i32
  }
}

</mosaic_0001>

<bundles_post_ra>
// kernel: tpu_custom_call.1
= control target key start
LH: loop header
LB: loop body
LE: loop exit
PB: predicated region body
PF: predicated region fallthrough
CT: control target
= control target key end

     0   :  { %9 = vsyncpa [#allocation3], 0  ;;  %s462_s0 = inlined_call_operand.vmem [shape: f32[1,8,256], index: 0, kind: input, shape index: {}]   ;;  %s463_s1 = inlined_call_operand.hbm [shape: f32[9,8,256], index: 1, kind: input, shape index: {}]   ;;  %s464_s2 = inlined_call_operand.vmem [shape: f32[8,4], index: 2, kind: input, shape index: {}]   ;;  %s465_s3 = inlined_call_operand.vmem [shape: f32[8,1], index: 3, kind: input, shape index: {}]   ;;  %s466_s4 = inlined_call_operand.hbm [shape: f32[1,16,256], index: 4, kind: output, shape index: {}]  }
   0x1   :  { %10 = vsyncpa [#allocation4], 0  ;;  %s362_s15 = smov [#allocation2]   ;;  %s314_s19 = scalar_lea.hbm %s463_s1, 2304 }
   0x2   :  { %s18_s16 = sshll.u32 %s362_s15, 4  ;;  %p315_p0 = scmp.ne.s32.totalorder %s463_s1, %s314_s19  ;;  %s19_s16 = int_to_ptr.vmem [resolvable:$true] %s18_s16 }
   0x3   :  { %p318_p1 = scmp.lt.u32.totalorder %s314_s19, %s463_s1 }
   0x5   :  { %p320_p2 = pnand %p318_p1, %p315_p0 }
   0x7   :  { %323 = shalt.err (!%p320_p2)
}
   0x8   :  { %s324_s24 = scalar_lea.vmem %s19_s16, 2304  ;;  %p329_p4 = scmp.lt.s32.totalorder %s19_s16, %s19_s16 }
   0x9   :  { %p325_p3 = scmp.ne.s32.totalorder %s19_s16, %s324_s24  ;;  %p330_p5 = scmp.lt.s32.totalorder %s324_s24, %s324_s24 }
   0xb   :  { %p331_p6 = por %p330_p5, %p329_p4 }
   0xd   :  { %p332_p7 = pnand %p331_p6, %p325_p3 }
   0xf   :  { %335 = shalt.err (!%p332_p7)
}
  0x10   :  { %s363_s25 = smov 256   ;;  %s364_s26 = smov 16  }
  0x11   :  { %24 = dma.hbm_to_vmem [thread:$0]  %s463_s1, 2304, %s19_s16, [#allocation3], %s363_s25, %s363_s25, %s364_s26  }
  0x12   :  { %358 = dma.done.wait [#allocation3], 2304  }
  0x13   :  { %359 = vsyncadd [#allocation3], 4294964992  ;;  %v365_v0 = vmov 0   ;;  %v32_v1 = vld [vmem:[%s462_s0] sm:$0xff]  ;;  %s366_s5 = smov 17   ;;  %v33_v2 = vld [vmem:[%s462_s0 + $0x8] sm:$0xff]  ;;  %v45_v10 = vlaneseq }
  0x14   :  { %309 = vset.pattern.permute.xlu1 %v365_v0  ;;  %308 = vset.pattern.permute.xlu0 %v365_v0  ;;  %s367_s1 = smov 15   ;;  %s368_s8 = smov 1   ;;  %v35_v3 = vld [vmem:[%s465_s3] sm:$0xff]  ;;  %v373_v5 = vmov 1   ;;  %v374_v6 = vmov 2   ;;  %v375_v7 = vmov 3  }
  0x15   :  { %56 = vrot.lane.b32.xlu1 %v32_v1, %s364_s26  ;;  %41 = vrot.lane.b32.xlu0 %v32_v1, %s366_s5  ;;  %s369_s9 = smov 127   ;;  %s370_s10 = smov 113   ;;  %v34_v4 = vld [vmem:[%s464_s2] sm:$0xff]  ;;  %v432_v13 = vand.u32 127, %v45_v10  ;;  %v38_v19 = vld [vmem:[#allocation2 + $0x48] sm:$0xff]  ;;  %v64_v32 = vld [vmem:[#allocation2 + $0x10] sm:$0xff] }
  0x16   :  { %s371_s11 = smov 112   ;;  %s372_s12 = smov 111   ;;  %v37_v18 = vld [vmem:[#allocation2 + $0x40] sm:$0xff]  ;;  %v51_v21 = vld [vmem:[#allocation2 + $0x8] sm:$0xff]  ;;  %v40_v26 = vmul.f32 %v38_v19, %v33_v2  ;;  %v65_v33 = vld [vmem:[#allocation2 + $0x18] sm:$0xff] }
  0x17   :  { %vm47_vm0 = vcmp.lt.s32.totalorder %v432_v13, 17  ;;  %v50_v20 = vld [vmem:[#allocation2] sm:$0xff]  ;;  %vm60_vm1 = vcmp.lt.s32.totalorder %v432_v13, 16  ;;  %v39_v27 = vmul.f32 %v37_v18, %v32_v1  ;;  %vm74_vm2 = vcmp.lt.s32.totalorder %v432_v13, 15  ;;  %v79_v39 = vld [vmem:[#allocation2 + $0x28] sm:$0xff]  ;;  %v92_v46 = vld [vmem:[#allocation2 + $0x30] sm:$0xff] }
  0x18   :  { %vm88_vm3 = vcmp.lt.s32.totalorder %v432_v13, 1  ;;  %v78_v38 = vld [vmem:[#allocation2 + $0x20] sm:$0xff]  ;;  %vm102_vm4 = vcmp.lt.s32.totalorder %v432_v13, 127  ;;  %v93_v47 = vld [vmem:[#allocation2 + $0x38] sm:$0xff]  ;;  %vm116_vm5 = vcmp.lt.s32.totalorder %v432_v13, 113  ;;  %v106_v54 = vld [vmem:[#allocation2 + $0x50] sm:$0xff] }
  0x19   :  { %58 = vrot.lane.b32.xlu1 %v33_v2, %s364_s26  ;;  %43 = vrot.lane.b32.xlu0 %v33_v2, %s366_s5  ;;  %v107_v55 = vld [vmem:[#allocation2 + $0x58] sm:$0xff]  ;;  %vm130_vm6 = vcmp.lt.s32.totalorder %v432_v13, 112  ;;  %v120_v60 = vld [vmem:[#allocation2 + $0x60] sm:$0xff]  ;;  %v121_v61 = vld [vmem:[#allocation2 + $0x68] sm:$0xff]  ;;  %vm144_vm7 = vcmp.lt.s32.totalorder %v432_v13, 111  ;;  %s376_s2 = smov [#allocation5]  }
  0x1a   :  { %s281_s3 = sshll.u32 %s376_s2, 4  ;;  %s282_s3 = int_to_ptr.vmem [resolvable:$true] %s281_s3 }
  0x1b   :  { %s336_s16 = scalar_lea.vmem %s282_s3, 512  ;;  %p341_p9 = scmp.lt.s32.totalorder %s282_s3, %s282_s3 }
  0x1c   :  { %p337_p8 = scmp.ne.s32.totalorder %s282_s3, %s336_s16  ;;  %p342_p10 = scmp.lt.s32.totalorder %s336_s16, %s336_s16 }
  0x1d   :  { %72 = vrot.lane.b32.xlu1 %v33_v2, %s367_s1  ;;  %70 = vrot.lane.b32.xlu0 %v32_v1, %s367_s1 }
  0x1e   :  { %p343_p11 = por %p342_p10, %p341_p9 }
  0x20   :  { %p344_p12 = pnand %p343_p11, %p337_p8 }
  0x21   :  { %86 = vrot.lane.b32.xlu1 %v33_v2, %s368_s8  ;;  %84 = vrot.lane.b32.xlu0 %v32_v1, %s368_s8 }
  0x25   :  { %100 = vrot.lane.b32.xlu1 %v33_v2, %s369_s9  ;;  %98 = vrot.lane.b32.xlu0 %v32_v1, %s369_s9 }
  0x29   :  { %114 = vrot.lane.b32.xlu1 %v33_v2, %s370_s10  ;;  %112 = vrot.lane.b32.xlu0 %v32_v1, %s370_s10 }
  0x2d   :  { %128 = vrot.lane.b32.xlu1 %v33_v2, %s371_s11  ;;  %126 = vrot.lane.b32.xlu0 %v32_v1, %s371_s11 }
  0x31   :  { %142 = vrot.lane.b32.xlu1 %v33_v2, %s372_s12  ;;  %140 = vrot.lane.b32.xlu0 %v32_v1, %s372_s12 }
  0x35   :  { %171 = vperm.xlu1 %309, %v35_v3   ;;  %156 = vperm.xlu0 %308, %v34_v4  }
  0x39   :  { %310 = vset.pattern.permute.xlu1 %v373_v5  ;;  %311 = vset.pattern.permute.xlu0 %v374_v6  ;;  %v134_v6 = vld [vmem:[#allocation2 + $0x70] sm:$0xff] }
  0x3a   :  { %177 = vperm.xlu1 %310, %v34_v4   ;;  %193 = vperm.xlu0 %311, %v34_v4  }
  0x3e   :  { %312 = vset.pattern.permute.xlu1 %v375_v7  ;;  %313 = vset.pattern.permute.xlu0 %v375_v7  ;;  %v135_v7 = vld [vmem:[#allocation2 + $0x78] sm:$0xff] }
  0x3f   :  { %209 = vperm.xlu1 %312, %v34_v4  }
  0x87   :  { %v57_v8 = vpop.permute.xlu1 %56  ;;  %v42_v9 = vpop.permute.xlu0 %41 }
  0x8b   :  { %v59_v11 = vpop.permute.xlu1 %58  ;;  %v44_v12 = vpop.permute.xlu0 %43 }
  0x8c   :  { %v48_v22 = vsel %vm47_vm0, %v42_v9, %v44_v12  ;;  %v49_v23 = vsel %vm47_vm0, %v44_v12, %v42_v9  ;;  %v61_v34 = vsel %vm60_vm1, %v57_v8, %v59_v11  ;;  %v62_v35 = vsel %vm60_vm1, %v59_v11, %v57_v8 }
  0x8d   :  { %v52_v28 = vmul.f32 %v50_v20, %v49_v23  ;;  %v53_v29 = vmul.f32 %v51_v21, %v48_v22  ;;  %v66_v42 = vmul.f32 %v64_v32, %v62_v35  ;;  %v67_v43 = vmul.f32 %v65_v33, %v61_v34 }
  0x8f   :  { %v73_v14 = vpop.permute.xlu1 %72  ;;  %v71_v15 = vpop.permute.xlu0 %70  ;;  %v54_v36 = vadd.f32 %v52_v28, %v39_v27  ;;  %v55_v37 = vadd.f32 %v53_v29, %v40_v26 }
  0x90   :  { %v75_v40 = vsel %vm74_vm2, %v71_v15, %v73_v14  ;;  %v76_v41 = vsel %vm74_vm2, %v73_v14, %v71_v15 }
  0x91   :  { %v69_v50 = vadd.f32 %v67_v43, %v55_v37  ;;  %v68_v51 = vadd.f32 %v66_v42, %v54_v36  ;;  %v80_v52 = vmul.f32 %v78_v38, %v76_v41  ;;  %v81_v53 = vmul.f32 %v79_v39, %v75_v40 }
  0x93   :  { %v87_v16 = vpop.permute.xlu1 %86  ;;  %v85_v17 = vpop.permute.xlu0 %84  ;;  %v82_v0 = vadd.f32 %v80_v52, %v68_v51  ;;  %v83_v1 = vadd.f32 %v81_v53, %v69_v50 }
  0x94   :  { %v89_v48 = vsel %vm88_vm3, %v85_v17, %v87_v16  ;;  %v90_v49 = vsel %vm88_vm3, %v87_v16, %v85_v17  ;;  %v148_v16 = vld [vmem:[#allocation2 + $0x80] sm:$0xff]  ;;  %v149_v17 = vld [vmem:[#allocation2 + $0x88] sm:$0xff] }
  0x95   :  { %v94_v58 = vmul.f32 %v92_v46, %v90_v49  ;;  %v95_v59 = vmul.f32 %v93_v47, %v89_v48 }
  0x97   :  { %v101_v24 = vpop.permute.xlu1 %100  ;;  %v99_v25 = vpop.permute.xlu0 %98  ;;  %v96_v11 = vadd.f32 %v94_v58, %v82_v0  ;;  %v97_v12 = vadd.f32 %v95_v59, %v83_v1 }
  0x98   :  { %v103_v56 = vsel %vm102_vm4, %v99_v25, %v101_v24  ;;  %v104_v57 = vsel %vm102_vm4, %v101_v24, %v99_v25  ;;  %v160_v24 = vshrl.u32 %v45_v10, 7 }
  0x99   :  { %v108_v2 = vmul.f32 %v106_v54, %v103_v56  ;;  %v109_v3 = vmul.f32 %v107_v55, %v104_v57 }
  0x9a   :  { %v161_v33 = vsub.s32 0, %v160_v24  ;;  %v228_v34 = vsub.s32 4, %v160_v24  ;;  %v182_v35 = vsub.s32 1, %v160_v24  ;;  %v240_v36 = vsub.s32 5, %v160_v24 }
  0x9b   :  { %v115_v30 = vpop.permute.xlu1 %114  ;;  %v113_v31 = vpop.permute.xlu0 %112  ;;  %v110_v20 = vadd.f32 %v108_v2, %v96_v11  ;;  %v111_v21 = vadd.f32 %v109_v3, %v97_v12  ;;  %v198_v42 = vsub.s32 2, %v160_v24  ;;  %v252_v10 = vsub.s32 6, %v160_v24 }
  0x9c   :  { %v117_v62 = vsel %vm116_vm5, %v113_v31, %v115_v30  ;;  %v118_v63 = vsel %vm116_vm5, %v115_v30, %v113_v31  ;;  %v214_v47 = vsub.s32 3, %v160_v24  ;;  %v264_v48 = vsub.s32 7, %v160_v24 }
  0x9d   :  { %v122_v14 = vmul.f32 %v120_v60, %v117_v62  ;;  %v123_v15 = vmul.f32 %v121_v61, %v118_v63 }
  0x9f   :  { %v129_v44 = vpop.permute.xlu1 %128  ;;  %v127_v45 = vpop.permute.xlu0 %126  ;;  %v124_v25 = vadd.f32 %v122_v14, %v110_v20  ;;  %v125_v26 = vadd.f32 %v123_v15, %v111_v21 }
  0xa0   :  { %v131_v8 = vsel %vm130_vm6, %v127_v45, %v129_v44  ;;  %v132_v9 = vsel %vm130_vm6, %v129_v44, %v127_v45 }
  0xa1   :  { %v136_v22 = vmul.f32 %v134_v6, %v131_v8  ;;  %v137_v23 = vmul.f32 %v135_v7, %v132_v9 }
  0xa3   :  { %v143_v4 = vpop.permute.xlu1 %142  ;;  %v141_v5 = vpop.permute.xlu0 %140  ;;  %v138_v29 = vadd.f32 %v136_v22, %v124_v25  ;;  %v139_v30 = vadd.f32 %v137_v23, %v125_v26 }
  0xa4   :  { %v145_v18 = vsel %vm144_vm7, %v141_v5, %v143_v4  ;;  %v146_v19 = vsel %vm144_vm7, %v143_v4, %v141_v5 }
  0xa5   :  { %v150_v27 = vmul.f32 %v148_v16, %v145_v18  ;;  %v151_v28 = vmul.f32 %v149_v17, %v146_v19 }
  0xa7   :  { %v152_v31 = vadd.f32 %v150_v27, %v138_v29  ;;  %v153_v32 = vadd.f32 %v151_v28, %v139_v30 }
  0xa9   :  { %v166_v13 = vrot.slane %v153_v32, %v161_v33  ;;  %v233_v37 = vrot.slane %v153_v32, %v228_v34  ;;  %v162_v38 = vrot.slane %v152_v31, %v161_v33  ;;  %v229_v39 = vrot.slane %v152_v31, %v228_v34 }
  0xaa   :  { %v183_v49 = vrot.slane %v152_v31, %v182_v35  ;;  %v187_v50 = vrot.slane %v153_v32, %v182_v35  ;;  %v241_v51 = vrot.slane %v152_v31, %v240_v36  ;;  %v245_v52 = vrot.slane %v153_v32, %v240_v36 }
  0xab   :  { %v203_v53 = vrot.slane %v153_v32, %v198_v42  ;;  %v257_v54 = vrot.slane %v153_v32, %v252_v10  ;;  %v199_v55 = vrot.slane %v152_v31, %v198_v42  ;;  %v253_v56 = vrot.slane %v152_v31, %v252_v10 }
  0xac   :  { %v215_v12 = vrot.slane %v152_v31, %v214_v47  ;;  %v219_v14 = vrot.slane %v153_v32, %v214_v47  ;;  %v265_v15 = vrot.slane %v152_v31, %v264_v48  ;;  %v269_v16 = vrot.slane %v153_v32, %v264_v48 }
  0xb4   :  { %v172_v40 = vpop.permute.xlu1 %171  ;;  %v157_v41 = vpop.permute.xlu0 %156 }
  0xb5   :  { %v167_v43 = vmul.f32 %v162_v38, %v157_v41  ;;  %v168_v44 = vmul.f32 %v166_v13, %v157_v41  ;;  %v234_v45 = vmul.f32 %v229_v39, %v157_v41  ;;  %v235_v46 = vmul.f32 %v233_v37, %v157_v41 }
  0xb7   :  { %v174_v57 = vadd.f32 %v172_v40, %v167_v43  ;;  %v175_v58 = vadd.f32 %v172_v40, %v168_v44  ;;  %v236_v59 = vadd.f32 %v234_v45, %v172_v40  ;;  %v237_v60 = vadd.f32 %v235_v46, %v172_v40 }
  0xb9   :  { %v178_v61 = vpop.permute.xlu1 %177  ;;  %v194_v62 = vpop.permute.xlu0 %193 }
  0xba   :  { %v188_v63 = vmul.f32 %v183_v49, %v178_v61  ;;  %v189_v0 = vmul.f32 %v187_v50, %v178_v61  ;;  %v246_v1 = vmul.f32 %v241_v51, %v178_v61  ;;  %v247_v2 = vmul.f32 %v245_v52, %v178_v61 }
  0xbb   :  { %v204_v3 = vmul.f32 %v199_v55, %v194_v62  ;;  %v205_v4 = vmul.f32 %v203_v53, %v194_v62  ;;  %v258_v5 = vmul.f32 %v253_v56, %v194_v62  ;;  %v259_v6 = vmul.f32 %v257_v54, %v194_v62 }
  0xbc   :  { %v191_v7 = vadd.f32 %v189_v0, %v175_v58  ;;  %v249_v8 = vadd.f32 %v247_v2, %v237_v60  ;;  %v190_v9 = vadd.f32 %v188_v63, %v174_v57  ;;  %v248_v11 = vadd.f32 %v246_v1, %v236_v59 }
  0xbe   :  { %v206_v17 = vadd.f32 %v204_v3, %v190_v9  ;;  %v207_v18 = vadd.f32 %v205_v4, %v191_v7  ;;  %v260_v19 = vadd.f32 %v258_v5, %v248_v11  ;;  %v261_v20 = vadd.f32 %v259_v6, %v249_v8  ;;  %v210_v21 = vpop.permute.xlu1 %209 }
  0xbf   :  { %v220_v22 = vmul.f32 %v215_v12, %v210_v21  ;;  %v221_v23 = vmul.f32 %v219_v14, %v210_v21  ;;  %v270_v24 = vmul.f32 %v265_v15, %v210_v21  ;;  %v271_v25 = vmul.f32 %v269_v16, %v210_v21 }
  0xc1   :  { %v222_v26 = vadd.f32 %v220_v22, %v206_v17  ;;  %v223_v27 = vadd.f32 %v221_v23, %v207_v18  ;;  %v272_v28 = vadd.f32 %v270_v24, %v260_v19  ;;  %v273_v29 = vadd.f32 %v271_v25, %v261_v20 }
  0xc3   :  { %224 = vst [vmem:[#allocation5] sm:$0xff] %v222_v26  ;;  %225 = vst [vmem:[#allocation5 + $0x8] sm:$0xff] %v223_v27 }
  0xc4   :  { %274 = vst [vmem:[#allocation5 + $0x10] sm:$0xff] %v272_v28  ;;  %275 = vst [vmem:[#allocation5 + $0x18] sm:$0xff] %v273_v29 }
  0xc5   :  { %347 = shalt.err (!%p344_p12)
}
  0xc6   :  { %s348_s19 = scalar_lea.hbm %s466_s4, 512 }
  0xc7   :  { %p349_p13 = scmp.ne.s32.totalorder %s466_s4, %s348_s19  ;;  %p352_p0 = scmp.lt.u32.totalorder %s348_s19, %s466_s4 }
  0xc9   :  { %p354_p1 = pnand %p352_p0, %p349_p13 }
  0xcb   :  { %357 = shalt.err (!%p354_p1)
}
  0xcc   :  { %287 = dma.vmem_to_hbm [thread:$0]  %s282_s3, 512, %s466_s4, [#allocation4], %s363_s25, %s363_s25, %s364_s26  }
  0xcd   :  { %360 = dma.done.wait [#allocation4], 512  }
  0xce   :  { %361 = vsyncadd [#allocation4], 4294966784 }
  0xcf   :  { %291 = vsyncpa [#allocation3], 1 }
  0xd0   :  { %292 = vsyncpa [#allocation4], 1 }

</bundles_post_ra>
